<compile_context>
chip_gen: v7x
topology: tpu7x:2x2x1
jax: 0.10.0
libtpu: 0.0.40
codegen_flags: <defaults>
</compile_context>

<pallas_src>
import functools

import jax
import jax.numpy as jnp
import numpy as np
from jax.experimental import pallas as pl
from jax.experimental.pallas import tpu as pltpu

BN_EPS = 1e-5


# ----------------------------- Pallas kernel ------------------------------- #

def _fused_stem_kernel(p_ref, w_ref, b_ref, o_ref, *, ho, wo, ho2, wo2, cout):
    """Fused Conv7x7/s2 (im2col matmul, BN folded) + bias + ReLU + MaxPool3x3/s2.

    p_ref: (ho*wo, K) bf16 patches for one image.  Within each conv row the Wo
           positions are ordered [even cols..., odd cols...], so the 3-tap
           horizontal pool reduces to static contiguous slices.
    w_ref: (K, cout) bf16 conv weights with the eval-mode BN scale folded in.
    b_ref: (1, cout) f32 folded BN bias.
    o_ref: (ho2*wo2, cout) f32 pooled output for one image.
    """
    # Conv as a single MXU matmul (bf16 in, f32 accumulate) + bias + ReLU.
    y = jnp.dot(p_ref[...], w_ref[...], preferred_element_type=jnp.float32)
    y = jnp.maximum(y + b_ref[...], 0.0)                  # (ho*wo, cout), >= 0

    half = wo // 2                                        # == wo2
    pad_row = jnp.zeros((1, cout), jnp.float32)           # valid pad: y >= 0

    # MaxPool2d(3, stride=2, padding=1), done entirely in VMEM/vregs.
    for r in range(ho2):
        # Vertical reduction over conv rows 2r-1, 2r, 2r+1 (clipped at edges).
        rows = [i for i in (2 * r - 1, 2 * r, 2 * r + 1) if 0 <= i < ho]
        slab = y[rows[0] * wo:(rows[0] + 1) * wo, :]
        for i in rows[1:]:
            slab = jnp.maximum(slab, y[i * wo:(i + 1) * wo, :])
        # Horizontal reduction: out[c] = max(x[2c-1], x[2c], x[2c+1]).
        # Even/odd reordering =>  x[2c] = slab[c],  x[2c+1] = slab[half+c].
        even = slab[:half, :]                             # conv cols 0,2,4,...
        odd = slab[half:, :]                              # conv cols 1,3,5,...
        odd_left = jnp.concatenate([pad_row, odd[:half - 1, :]], axis=0)
        pooled = jnp.maximum(jnp.maximum(even, odd), odd_left)   # (wo2, cout)
        o_ref[r * wo2:(r + 1) * wo2, :] = pooled


# ------------------------------ JAX wrapper -------------------------------- #

def _im2col_even_odd(x_nhwc, kh, kw, stride, pad):
    """im2col with the conv-output columns reordered as [even cols | odd cols]."""
    n, h, w, c = x_nhwc.shape
    ho = (h + 2 * pad - kh) // stride + 1
    wo = (w + 2 * pad - kw) // stride + 1
    assert wo % 2 == 0, "even/odd column split requires an even conv width"
    xp = jnp.pad(x_nhwc, ((0, 0), (pad, pad), (pad, pad), (0, 0)))
    cols = []
    for di in range(kh):
        for dj in range(kw):
            cols.append(xp[:, di:di + stride * ho:stride,
                           dj:dj + stride * wo:stride, :])
    patches = jnp.concatenate(cols, axis=-1)              # (N, Ho, Wo, kh*kw*C)
    # Reorder conv columns: even first, then odd (enables static-slice pooling).
    patches = jnp.concatenate(
        [patches[:, :, 0::2, :], patches[:, :, 1::2, :]], axis=2)
    return patches.reshape(n, ho * wo, kh * kw * c), ho, wo


def resnet_intermediate_forward(x_nchw, conv_w, gamma, beta, run_mean, run_var):
    """Stem forward.  x_nchw: (N, 3, H, W) f32.  Returns NCHW (N, 64, H//4, W//4)."""
    x = jnp.transpose(x_nchw, (0, 2, 3, 1)).astype(jnp.float32)   # NHWC
    n, h, w, cin = x.shape
    cout, _, kh, kw = conv_w.shape

    patches, ho, wo = _im2col_even_odd(x, kh, kw, stride=2, pad=3)
    k = patches.shape[-1]                                 # 147, no K padding

    # Fold eval-mode BatchNorm into the conv weights / a single bias vector.
    scale = gamma / jnp.sqrt(run_var + BN_EPS)
    bias = (beta - run_mean * scale).reshape(1, cout).astype(jnp.float32)
    w2d = jnp.transpose(conv_w, (2, 3, 1, 0)).reshape(k, cout)    # (kh*kw*Cin, Cout)
    w2d = (w2d * scale[None, :]).astype(jnp.bfloat16)

    patches = patches.astype(jnp.bfloat16)                # halve HBM read bytes

    ho2 = (ho + 2 * 1 - 3) // 2 + 1                       # pool k=3, s=2, p=1
    wo2 = (wo + 2 * 1 - 3) // 2 + 1

    kernel = functools.partial(_fused_stem_kernel, ho=ho, wo=wo,
                               ho2=ho2, wo2=wo2, cout=cout)

    pooled = pl.pallas_call(
        kernel,
        out_shape=jax.ShapeDtypeStruct((n, ho2 * wo2, cout), jnp.float32),
        grid=(n,),
        in_specs=[
            # whole-image patch tile; last two dims == full array dims
            pl.BlockSpec((None, ho * wo, k), lambda i: (i, 0, 0)),
            pl.BlockSpec((k, cout), lambda i: (0, 0)),
            pl.BlockSpec((1, cout), lambda i: (0, 0)),
        ],
        out_specs=pl.BlockSpec((None, ho2 * wo2, cout), lambda i: (i, 0, 0)),
        compiler_params=pltpu.CompilerParams(
            dimension_semantics=("parallel",)),
    )(patches, w2d, bias)

    out_nhwc = pooled.reshape(n, ho2, wo2, cout)
    return jnp.transpose(out_nhwc, (0, 3, 1, 2))          # back to NCHW


# --------------------------- pure-JAX reference ----------------------------- #

def reference_forward(x_nchw, conv_w, gamma, beta, run_mean, run_var):
    x = jnp.transpose(x_nchw, (0, 2, 3, 1))
    w = jnp.transpose(conv_w, (2, 3, 1, 0))                       # HWIO
    y = jax.lax.conv_general_dilated(
        x, w, window_strides=(2, 2), padding=((3, 3), (3, 3)),
        dimension_numbers=("NHWC", "HWIO", "NHWC"),
        precision=jax.lax.Precision.HIGHEST)
    scale = gamma / jnp.sqrt(run_var + BN_EPS)
    y = jnp.maximum(y * scale + (beta - run_mean * scale), 0.0)
    y = jnp.pad(y, ((0, 0), (1, 1), (1, 1), (0, 0)), constant_values=-jnp.inf)
    y = jax.lax.reduce_window(y, -jnp.inf, jax.lax.max,
                              (1, 3, 3, 1), (1, 2, 2, 1), "VALID")
    return jnp.transpose(y, (0, 3, 1, 2))


# ---------------------------------- main ------------------------------------ #

if __name__ == "__main__":
    key = jax.random.PRNGKey(0)
    k1, k2, k3, k4, k5, k6 = jax.random.split(key, 6)

    # ResNet18 stem parameter shapes (deterministic synthetic init, no checkpoint).
    conv_w = jax.random.normal(k1, (64, 3, 7, 7), jnp.float32) * 0.05
    gamma = 0.5 + jax.random.uniform(k2, (64,), jnp.float32)
    beta = jax.random.normal(k3, (64,), jnp.float32) * 0.1
    run_mean = jax.random.normal(k4, (64,), jnp.float32) * 0.1
    run_var = 0.5 + jax.random.uniform(k5, (64,), jnp.float32)

    # Input in PyTorch NCHW convention (small shape).
    x = jax.random.normal(k6, (2, 3, 32, 32), jnp.float32)

    out = jax.jit(resnet_intermediate_forward)(x, conv_w, gamma, beta,
                                               run_mean, run_var)
    out = jax.block_until_ready(out)
    assert out.shape == (2, 64, 8, 8), out.shape

    ref = jax.block_until_ready(
        reference_forward(x, conv_w, gamma, beta, run_mean, run_var))
    np.testing.assert_allclose(np.asarray(out), np.asarray(ref),
                               rtol=1e-2, atol=1e-2)

    print("KERNEL_OK")
</pallas_src>

<mosaic_0001>
module attributes {stable_mosaic.version = 11 : i64} {
  func.func @_fused_stem_kernel(%arg0: i32, %arg1: memref<1x256x147xbf16, #tpu.memory_space<vmem>>, %arg2: memref<147x64xbf16, #tpu.memory_space<vmem>>, %arg3: memref<1x64xf32, #tpu.memory_space<vmem>>, %arg4: memref<1x64x64xf32, #tpu.memory_space<vmem>>) attributes {dimension_semantics = [#tpu.dimension_semantics<parallel>], iteration_bounds = array<i64: 2>, scalar_prefetch = 0 : i64, scratch_operands = 0 : i64, tpu.core_type = #tpu.core_type<tc>, window_params = [{transform_indices = @transform_0, window_bounds = array<i64: 1, 256, 147>}, {pipeline_mode = #tpu.pipeline_mode<synchronous>, transform_indices = @transform_1, window_bounds = array<i64: 147, 64>}, {pipeline_mode = #tpu.pipeline_mode<synchronous>, transform_indices = @transform_2, window_bounds = array<i64: 1, 64>}, {transform_indices = @transform_3, window_bounds = array<i64: 1, 64, 64>}]} {
    %c0 = arith.constant 0 : index
    %c0_0 = arith.constant 0 : index
    %c0_1 = arith.constant 0 : index
    %0 = vector.load %arg1[%c0, %c0_0, %c0_1] : memref<1x256x147xbf16, #tpu.memory_space<vmem>>, vector<1x256x147xbf16>
    %1 = vector.shape_cast %0 : vector<1x256x147xbf16> to vector<256x147xbf16>
    %c0_2 = arith.constant 0 : index
    %c0_3 = arith.constant 0 : index
    %2 = vector.load %arg2[%c0_2, %c0_3] : memref<147x64xbf16, #tpu.memory_space<vmem>>, vector<147x64xbf16>
    %cst = arith.constant dense<0.000000e+00> : vector<256x64xf32>
    %3 = tpu.matmul %1, %2, %cst {dimension_numbers = #tpu.dot_dimension_numbers<[1], [0], [0], [1], [0, 0, 1, 1], [], []>} : vector<256x147xbf16>, vector<147x64xbf16>, vector<256x64xf32> -> vector<256x64xf32>
    %c0_4 = arith.constant 0 : index
    %c0_5 = arith.constant 0 : index
    %4 = vector.load %arg3[%c0_4, %c0_5] : memref<1x64xf32, #tpu.memory_space<vmem>>, vector<1x64xf32>
    %5 = vector.broadcast %4 : vector<1x64xf32> to vector<256x64xf32>
    %6 = arith.addf %3, %5 : vector<256x64xf32>
    %cst_6 = arith.constant 0.000000e+00 : f32
    %7 = vector.broadcast %cst_6 : f32 to vector<256x64xf32>
    %8 = arith.maximumf %6, %7 : vector<256x64xf32>
    %cst_7 = arith.constant 0.000000e+00 : f32
    %9 = vector.broadcast %cst_7 : f32 to vector<1x64xf32>
    %10 = vector.extract_strided_slice %8 {offsets = [0, 0], sizes = [16, 64], strides = [1, 1]} : vector<256x64xf32> to vector<16x64xf32>
    %11 = vector.extract_strided_slice %8 {offsets = [16, 0], sizes = [16, 64], strides = [1, 1]} : vector<256x64xf32> to vector<16x64xf32>
    %12 = arith.maximumf %10, %11 : vector<16x64xf32>
    %13 = vector.extract_strided_slice %12 {offsets = [0, 0], sizes = [8, 64], strides = [1, 1]} : vector<16x64xf32> to vector<8x64xf32>
    %14 = vector.extract_strided_slice %12 {offsets = [8, 0], sizes = [8, 64], strides = [1, 1]} : vector<16x64xf32> to vector<8x64xf32>
    %15 = vector.extract_strided_slice %14 {offsets = [0, 0], sizes = [7, 64], strides = [1, 1]} : vector<8x64xf32> to vector<7x64xf32>
    %16 = tpu.concatenate %9, %15 in 0 : vector<1x64xf32>, vector<7x64xf32> -> vector<8x64xf32>
    %17 = arith.maximumf %13, %14 : vector<8x64xf32>
    %18 = arith.maximumf %17, %16 : vector<8x64xf32>
    %c0_8 = arith.constant 0 : index
    %c0_9 = arith.constant 0 : index
    %c0_10 = arith.constant 0 : index
    %19 = vector.load %arg4[%c0_8, %c0_9, %c0_10] : memref<1x64x64xf32, #tpu.memory_space<vmem>>, vector<1x8x64xf32>
    %20 = vector.shape_cast %19 : vector<1x8x64xf32> to vector<8x64xf32>
    %21 = vector.shape_cast %18 : vector<8x64xf32> to vector<1x8x64xf32>
    tpu.vector_store %arg4[%c0_8, %c0_9, %c0_10], %21 {strides = array<i32>} : memref<1x64x64xf32, #tpu.memory_space<vmem>>, vector<1x8x64xf32>,
    %22 = vector.extract_strided_slice %8 {offsets = [16, 0], sizes = [16, 64], strides = [1, 1]} : vector<256x64xf32> to vector<16x64xf32>
    %23 = vector.extract_strided_slice %8 {offsets = [32, 0], sizes = [16, 64], strides = [1, 1]} : vector<256x64xf32> to vector<16x64xf32>
    %24 = arith.maximumf %22, %23 : vector<16x64xf32>
    %25 = vector.extract_strided_slice %8 {offsets = [48, 0], sizes = [16, 64], strides = [1, 1]} : vector<256x64xf32> to vector<16x64xf32>
    %26 = arith.maximumf %24, %25 : vector<16x64xf32>
    %27 = vector.extract_strided_slice %26 {offsets = [0, 0], sizes = [8, 64], strides = [1, 1]} : vector<16x64xf32> to vector<8x64xf32>
    %28 = vector.extract_strided_slice %26 {offsets = [8, 0], sizes = [8, 64], strides = [1, 1]} : vector<16x64xf32> to vector<8x64xf32>
    %29 = vector.extract_strided_slice %28 {offsets = [0, 0], sizes = [7, 64], strides = [1, 1]} : vector<8x64xf32> to vector<7x64xf32>
    %30 = tpu.concatenate %9, %29 in 0 : vector<1x64xf32>, vector<7x64xf32> -> vector<8x64xf32>
    %31 = arith.maximumf %27, %28 : vector<8x64xf32>
    %32 = arith.maximumf %31, %30 : vector<8x64xf32>
    %c0_11 = arith.constant 0 : index
    %c8 = arith.constant 8 : index
    %c0_12 = arith.constant 0 : index
    %33 = vector.load %arg4[%c0_11, %c8, %c0_12] : memref<1x64x64xf32, #tpu.memory_space<vmem>>, vector<1x8x64xf32>
    %34 = vector.shape_cast %33 : vector<1x8x64xf32> to vector<8x64xf32>
    %35 = vector.shape_cast %32 : vector<8x64xf32> to vector<1x8x64xf32>
    tpu.vector_store %arg4[%c0_11, %c8, %c0_12], %35 {strides = array<i32>} : memref<1x64x64xf32, #tpu.memory_space<vmem>>, vector<1x8x64xf32>,
    %36 = vector.extract_strided_slice %8 {offsets = [48, 0], sizes = [16, 64], strides = [1, 1]} : vector<256x64xf32> to vector<16x64xf32>
    %37 = vector.extract_strided_slice %8 {offsets = [64, 0], sizes = [16, 64], strides = [1, 1]} : vector<256x64xf32> to vector<16x64xf32>
    %38 = arith.maximumf %36, %37 : vector<16x64xf32>
    %39 = vector.extract_strided_slice %8 {offsets = [80, 0], sizes = [16, 64], strides = [1, 1]} : vector<256x64xf32> to vector<16x64xf32>
    %40 = arith.maximumf %38, %39 : vector<16x64xf32>
    %41 = vector.extract_strided_slice %40 {offsets = [0, 0], sizes = [8, 64], strides = [1, 1]} : vector<16x64xf32> to vector<8x64xf32>
    %42 = vector.extract_strided_slice %40 {offsets = [8, 0], sizes = [8, 64], strides = [1, 1]} : vector<16x64xf32> to vector<8x64xf32>
    %43 = vector.extract_strided_slice %42 {offsets = [0, 0], sizes = [7, 64], strides = [1, 1]} : vector<8x64xf32> to vector<7x64xf32>
    %44 = tpu.concatenate %9, %43 in 0 : vector<1x64xf32>, vector<7x64xf32> -> vector<8x64xf32>
    %45 = arith.maximumf %41, %42 : vector<8x64xf32>
    %46 = arith.maximumf %45, %44 : vector<8x64xf32>
    %c0_13 = arith.constant 0 : index
    %c16 = arith.constant 16 : index
    %c0_14 = arith.constant 0 : index
    %47 = vector.load %arg4[%c0_13, %c16, %c0_14] : memref<1x64x64xf32, #tpu.memory_space<vmem>>, vector<1x8x64xf32>
    %48 = vector.shape_cast %47 : vector<1x8x64xf32> to vector<8x64xf32>
    %49 = vector.shape_cast %46 : vector<8x64xf32> to vector<1x8x64xf32>
    tpu.vector_store %arg4[%c0_13, %c16, %c0_14], %49 {strides = array<i32>} : memref<1x64x64xf32, #tpu.memory_space<vmem>>, vector<1x8x64xf32>,
    %50 = vector.extract_strided_slice %8 {offsets = [80, 0], sizes = [16, 64], strides = [1, 1]} : vector<256x64xf32> to vector<16x64xf32>
    %51 = vector.extract_strided_slice %8 {offsets = [96, 0], sizes = [16, 64], strides = [1, 1]} : vector<256x64xf32> to vector<16x64xf32>
    %52 = arith.maximumf %50, %51 : vector<16x64xf32>
    %53 = vector.extract_strided_slice %8 {offsets = [112, 0], sizes = [16, 64], strides = [1, 1]} : vector<256x64xf32> to vector<16x64xf32>
    %54 = arith.maximumf %52, %53 : vector<16x64xf32>
    %55 = vector.extract_strided_slice %54 {offsets = [0, 0], sizes = [8, 64], strides = [1, 1]} : vector<16x64xf32> to vector<8x64xf32>
    %56 = vector.extract_strided_slice %54 {offsets = [8, 0], sizes = [8, 64], strides = [1, 1]} : vector<16x64xf32> to vector<8x64xf32>
    %57 = vector.extract_strided_slice %56 {offsets = [0, 0], sizes = [7, 64], strides = [1, 1]} : vector<8x64xf32> to vector<7x64xf32>
    %58 = tpu.concatenate %9, %57 in 0 : vector<1x64xf32>, vector<7x64xf32> -> vector<8x64xf32>
    %59 = arith.maximumf %55, %56 : vector<8x64xf32>
    %60 = arith.maximumf %59, %58 : vector<8x64xf32>
    %c0_15 = arith.constant 0 : index
    %c24 = arith.constant 24 : index
    %c0_16 = arith.constant 0 : index
    %61 = vector.load %arg4[%c0_15, %c24, %c0_16] : memref<1x64x64xf32, #tpu.memory_space<vmem>>, vector<1x8x64xf32>
    %62 = vector.shape_cast %61 : vector<1x8x64xf32> to vector<8x64xf32>
    %63 = vector.shape_cast %60 : vector<8x64xf32> to vector<1x8x64xf32>
    tpu.vector_store %arg4[%c0_15, %c24, %c0_16], %63 {strides = array<i32>} : memref<1x64x64xf32, #tpu.memory_space<vmem>>, vector<1x8x64xf32>,
    %64 = vector.extract_strided_slice %8 {offsets = [112, 0], sizes = [16, 64], strides = [1, 1]} : vector<256x64xf32> to vector<16x64xf32>
    %65 = vector.extract_strided_slice %8 {offsets = [128, 0], sizes = [16, 64], strides = [1, 1]} : vector<256x64xf32> to vector<16x64xf32>
    %66 = arith.maximumf %64, %65 : vector<16x64xf32>
    %67 = vector.extract_strided_slice %8 {offsets = [144, 0], sizes = [16, 64], strides = [1, 1]} : vector<256x64xf32> to vector<16x64xf32>
    %68 = arith.maximumf %66, %67 : vector<16x64xf32>
    %69 = vector.extract_strided_slice %68 {offsets = [0, 0], sizes = [8, 64], strides = [1, 1]} : vector<16x64xf32> to vector<8x64xf32>
    %70 = vector.extract_strided_slice %68 {offsets = [8, 0], sizes = [8, 64], strides = [1, 1]} : vector<16x64xf32> to vector<8x64xf32>
    %71 = vector.extract_strided_slice %70 {offsets = [0, 0], sizes = [7, 64], strides = [1, 1]} : vector<8x64xf32> to vector<7x64xf32>
    %72 = tpu.concatenate %9, %71 in 0 : vector<1x64xf32>, vector<7x64xf32> -> vector<8x64xf32>
    %73 = arith.maximumf %69, %70 : vector<8x64xf32>
    %74 = arith.maximumf %73, %72 : vector<8x64xf32>
    %c0_17 = arith.constant 0 : index
    %c32 = arith.constant 32 : index
    %c0_18 = arith.constant 0 : index
    %75 = vector.load %arg4[%c0_17, %c32, %c0_18] : memref<1x64x64xf32, #tpu.memory_space<vmem>>, vector<1x8x64xf32>
    %76 = vector.shape_cast %75 : vector<1x8x64xf32> to vector<8x64xf32>
    %77 = vector.shape_cast %74 : vector<8x64xf32> to vector<1x8x64xf32>
    tpu.vector_store %arg4[%c0_17, %c32, %c0_18], %77 {strides = array<i32>} : memref<1x64x64xf32, #tpu.memory_space<vmem>>, vector<1x8x64xf32>,
    %78 = vector.extract_strided_slice %8 {offsets = [144, 0], sizes = [16, 64], strides = [1, 1]} : vector<256x64xf32> to vector<16x64xf32>
    %79 = vector.extract_strided_slice %8 {offsets = [160, 0], sizes = [16, 64], strides = [1, 1]} : vector<256x64xf32> to vector<16x64xf32>
    %80 = arith.maximumf %78, %79 : vector<16x64xf32>
    %81 = vector.extract_strided_slice %8 {offsets = [176, 0], sizes = [16, 64], strides = [1, 1]} : vector<256x64xf32> to vector<16x64xf32>
    %82 = arith.maximumf %80, %81 : vector<16x64xf32>
    %83 = vector.extract_strided_slice %82 {offsets = [0, 0], sizes = [8, 64], strides = [1, 1]} : vector<16x64xf32> to vector<8x64xf32>
    %84 = vector.extract_strided_slice %82 {offsets = [8, 0], sizes = [8, 64], strides = [1, 1]} : vector<16x64xf32> to vector<8x64xf32>
    %85 = vector.extract_strided_slice %84 {offsets = [0, 0], sizes = [7, 64], strides = [1, 1]} : vector<8x64xf32> to vector<7x64xf32>
    %86 = tpu.concatenate %9, %85 in 0 : vector<1x64xf32>, vector<7x64xf32> -> vector<8x64xf32>
    %87 = arith.maximumf %83, %84 : vector<8x64xf32>
    %88 = arith.maximumf %87, %86 : vector<8x64xf32>
    %c0_19 = arith.constant 0 : index
    %c40 = arith.constant 40 : index
    %c0_20 = arith.constant 0 : index
    %89 = vector.load %arg4[%c0_19, %c40, %c0_20] : memref<1x64x64xf32, #tpu.memory_space<vmem>>, vector<1x8x64xf32>
    %90 = vector.shape_cast %89 : vector<1x8x64xf32> to vector<8x64xf32>
    %91 = vector.shape_cast %88 : vector<8x64xf32> to vector<1x8x64xf32>
    tpu.vector_store %arg4[%c0_19, %c40, %c0_20], %91 {strides = array<i32>} : memref<1x64x64xf32, #tpu.memory_space<vmem>>, vector<1x8x64xf32>,
    %92 = vector.extract_strided_slice %8 {offsets = [176, 0], sizes = [16, 64], strides = [1, 1]} : vector<256x64xf32> to vector<16x64xf32>
    %93 = vector.extract_strided_slice %8 {offsets = [192, 0], sizes = [16, 64], strides = [1, 1]} : vector<256x64xf32> to vector<16x64xf32>
    %94 = arith.maximumf %92, %93 : vector<16x64xf32>
    %95 = vector.extract_strided_slice %8 {offsets = [208, 0], sizes = [16, 64], strides = [1, 1]} : vector<256x64xf32> to vector<16x64xf32>
    %96 = arith.maximumf %94, %95 : vector<16x64xf32>
    %97 = vector.extract_strided_slice %96 {offsets = [0, 0], sizes = [8, 64], strides = [1, 1]} : vector<16x64xf32> to vector<8x64xf32>
    %98 = vector.extract_strided_slice %96 {offsets = [8, 0], sizes = [8, 64], strides = [1, 1]} : vector<16x64xf32> to vector<8x64xf32>
    %99 = vector.extract_strided_slice %98 {offsets = [0, 0], sizes = [7, 64], strides = [1, 1]} : vector<8x64xf32> to vector<7x64xf32>
    %100 = tpu.concatenate %9, %99 in 0 : vector<1x64xf32>, vector<7x64xf32> -> vector<8x64xf32>
    %101 = arith.maximumf %97, %98 : vector<8x64xf32>
    %102 = arith.maximumf %101, %100 : vector<8x64xf32>
    %c0_21 = arith.constant 0 : index
    %c48 = arith.constant 48 : index
    %c0_22 = arith.constant 0 : index
    %103 = vector.load %arg4[%c0_21, %c48, %c0_22] : memref<1x64x64xf32, #tpu.memory_space<vmem>>, vector<1x8x64xf32>
    %104 = vector.shape_cast %103 : vector<1x8x64xf32> to vector<8x64xf32>
    %105 = vector.shape_cast %102 : vector<8x64xf32> to vector<1x8x64xf32>
    tpu.vector_store %arg4[%c0_21, %c48, %c0_22], %105 {strides = array<i32>} : memref<1x64x64xf32, #tpu.memory_space<vmem>>, vector<1x8x64xf32>,
    %106 = vector.extract_strided_slice %8 {offsets = [208, 0], sizes = [16, 64], strides = [1, 1]} : vector<256x64xf32> to vector<16x64xf32>
    %107 = vector.extract_strided_slice %8 {offsets = [224, 0], sizes = [16, 64], strides = [1, 1]} : vector<256x64xf32> to vector<16x64xf32>
    %108 = arith.maximumf %106, %107 : vector<16x64xf32>
    %109 = vector.extract_strided_slice %8 {offsets = [240, 0], sizes = [16, 64], strides = [1, 1]} : vector<256x64xf32> to vector<16x64xf32>
    %110 = arith.maximumf %108, %109 : vector<16x64xf32>
    %111 = vector.extract_strided_slice %110 {offsets = [0, 0], sizes = [8, 64], strides = [1, 1]} : vector<16x64xf32> to vector<8x64xf32>
    %112 = vector.extract_strided_slice %110 {offsets = [8, 0], sizes = [8, 64], strides = [1, 1]} : vector<16x64xf32> to vector<8x64xf32>
    %113 = vector.extract_strided_slice %112 {offsets = [0, 0], sizes = [7, 64], strides = [1, 1]} : vector<8x64xf32> to vector<7x64xf32>
    %114 = tpu.concatenate %9, %113 in 0 : vector<1x64xf32>, vector<7x64xf32> -> vector<8x64xf32>
    %115 = arith.maximumf %111, %112 : vector<8x64xf32>
    %116 = arith.maximumf %115, %114 : vector<8x64xf32>
    %c0_23 = arith.constant 0 : index
    %c56 = arith.constant 56 : index
    %c0_24 = arith.constant 0 : index
    %117 = vector.load %arg4[%c0_23, %c56, %c0_24] : memref<1x64x64xf32, #tpu.memory_space<vmem>>, vector<1x8x64xf32>
    %118 = vector.shape_cast %117 : vector<1x8x64xf32> to vector<8x64xf32>
    %119 = vector.shape_cast %116 : vector<8x64xf32> to vector<1x8x64xf32>
    tpu.vector_store %arg4[%c0_23, %c56, %c0_24], %119 {strides = array<i32>} : memref<1x64x64xf32, #tpu.memory_space<vmem>>, vector<1x8x64xf32>,
    return
  }
  func.func @transform_0(%arg0: i32) -> (i32, i32, i32) {
    %c0_i32 = arith.constant 0 : i32
    %c0_i32_0 = arith.constant 0 : i32
    %c0_i32_1 = arith.constant 0 : i32
    return %arg0, %c0_i32, %c0_i32_0 : i32, i32, i32
  }
  func.func @transform_1(%arg0: i32) -> (i32, i32) {
    %c0_i32 = arith.constant 0 : i32
    %c0_i32_0 = arith.constant 0 : i32
    %c0_i32_1 = arith.constant 0 : i32
    return %c0_i32, %c0_i32_0 : i32, i32
  }
  func.func @transform_2(%arg0: i32) -> (i32, i32) {
    %c0_i32 = arith.constant 0 : i32
    %c0_i32_0 = arith.constant 0 : i32
    %c0_i32_1 = arith.constant 0 : i32
    return %c0_i32, %c0_i32_0 : i32, i32
  }
  func.func @transform_3(%arg0: i32) -> (i32, i32, i32) {
    %c0_i32 = arith.constant 0 : i32
    %c0_i32_0 = arith.constant 0 : i32
    %c0_i32_1 = arith.constant 0 : i32
    return %arg0, %c0_i32, %c0_i32_0 : i32, i32, i32
  }
}

</mosaic_0001>

<bundles_post_ra>
// kernel: resnet_intermediate_forward.1
= control target key start
LH: loop header
LB: loop body
LE: loop exit
PB: predicated region body
PF: predicated region fallthrough
CT: control target
= control target key end

     0   :  { %8 = vsyncpa [#allocation3], 0  ;;  %s1396_s0 = inlined_call_operand.vmem [shape: bf16[2,256,147], index: 0, kind: input, shape index: {}]   ;;  %s1397_s1 = inlined_call_operand.vmem [shape: bf16[147,64], index: 1, kind: input, shape index: {}]   ;;  %s1398_s2 = inlined_call_operand.vmem [shape: f32[1,64], index: 2, kind: input, shape index: {}]   ;;  %s1399_s3 = inlined_call_operand.hbm [shape: f32[2,64,64], index: 3, kind: output, shape index: {}]  }
   0x1   :  { %10 = vsyncpa [#allocation3 + $0x1], 0  ;;  %s1124_s12 = smov 0   ;;  %s1126_s13 = smov 0  }
   0x2   :  { %s1128_s14 = smov 0   ;;  %s1130_s15 = smov 0  }
   0x3 LB: > { %s1145_s16 = sadd.s32 4294967295, %s1097_s15   ;;  %s841_s17 = sadd.s32 4294967294, %s1097_s15   ;;  %s1097_s15 = sphi %s1130_s15, %s1405_s15   ;;  %s1093_s14 = sphi %s1128_s14, %s1404_s14   ;;  %s1089_s13 = sphi %s1126_s13, %s1403_s13   ;;  %s1085_s12 = sphi %s1124_s12, %s1402_s12  }
   0x4   : > { %s1149_s18 = sadd.s32 1, %s1097_s15   ;;  %s91_s19 = sadd.s32 1, %s1093_s14 }
   0x5   : > { %s88_s20 = ssub.s32 %s1097_s15, %s1149_s18  ;;  %p101_p0 = scmp.ne.s32.totalorder %s1093_s14, %s1089_s13 }
   0x6   : > { %p89_p1 = scmp.eq.s32.totalorder %s88_s20, 0  ;;  %p102_p2 = scmp.eq.s32.totalorder %s1145_s16, 1 }
   0x7   : > { %p107_p3 = scmp.ne.s32.totalorder %s1089_s13, %s1085_s12  ;;  %p108_p4 = scmp.eq.s32.totalorder %s841_s17, 1 }
   0x8   : > { %s1160_s21 = scalar_select %p89_p1, %s1093_s14, %s91_s19  }
   0x9   : > { %p1162_p5 = por %p102_p2, %p101_p0  ;;  %p1166_p6 = por %p108_p4, %p107_p3 }
   0xa   : > { %p844_p7 = scmp.ge.s32.totalorder %s1097_s15, 1  ;;  %p140_p8 = scmp.lt.s32.totalorder %s1097_s15, 3 }
   0xc   : > { %p141_p9 = pnand %p844_p7, %p140_p8 }
   0xd   : > { %v977_v0 = vld [vmem:[%s1397_s1] sm:$0xff] (!%p141_p9)   ;;  %v1099_v1 = vmov (!%p141_p9), 0   ;;  %v978_v2 = vld [vmem:[%s1397_s1 + $0x8] sm:$0xff] (!%p141_p9)   ;;  %v979_v3 = vld [vmem:[%s1397_s1 + $0x10] sm:$0xff] (!%p141_p9)   ;;  %p164_p10 = scmp.lt.s32.totalorder (!%p141_p9), %s1145_s16, 1  ;;  %vm429_vm0 = vcmask (!%p141_p9), 154624  }
   0xe   : > { %144 = sbr.rel (%p141_p9) target bundleno = 352 (0x160), region = 32  ;;  %485 = vmatprep.subr.bf16.mxu0 (!%p141_p9), %v1099_v1  ;;  %914 = vmatprep.subr.bf16.mxu1 (!%p141_p9), %v1099_v1  ;;  %v980_v4 = vld [vmem:[%s1397_s1 + $0x18] sm:$0xff] (!%p141_p9)   ;;  %v981_v6 = vld [vmem:[%s1397_s1 + $0x20] sm:$0xff] (!%p141_p9)   ;;  %v982_v8 = vld [vmem:[%s1397_s1 + $0x28] sm:$0xff] (!%p141_p9)   ;;  %vm478_vm1 = vcmask (!%p141_p9), 1040384   ;;  %vm479_vm2 = vcmask (!%p141_p9), 1041408  }
   0xf   : > { %486 = vmatpush1.bf16.msra.mxu0 (!%p141_p9), %v977_v0  ;;  %924 = vmatpush1.bf16.msra.mxu1 (!%p141_p9), %v977_v0  ;;  %v983_v9 = vld [vmem:[%s1397_s1 + $0x30] sm:$0xff] (!%p141_p9)   ;;  %v984_v10 = vld [vmem:[%s1397_s1 + $0x38] sm:$0xff] (!%p141_p9)   ;;  %v1100_v11 = vmov (!%p141_p9), 65535   ;;  %v985_v13 = vld [vmem:[%s1397_s1 + $0x40] sm:$0xff] (!%p141_p9)   ;;  %vm686_vm3 = vcmask (!%p141_p9), 523264   ;;  %s1101_s24 = smov (!%p141_p9), [#allocation2]  }
  0x10   : > { %487 = vmatprep.subr.bf16.mxu0 (!%p141_p9), %v1099_v1  ;;  %915 = vmatprep.subr.bf16.mxu1 (!%p141_p9), %v1099_v1  ;;  %v480_v12 = vsel (!%p141_p9), %vm478_vm1, 4294967295, %v1100_v11  ;;  %v986_v14 = vld [vmem:[%s1397_s1 + $0x48] ss:$0 sps:$4 sm:$0x33] (!%p141_p9)   ;;  %v1265_v55 = vld [vmem:[%s1398_s2] ss:$0 sm:$0xff] (!%p141_p9) }
  0x11   : > { %v481_v15 = vsel (!%p141_p9), %vm479_vm2, %v480_v12, 0  ;;  %s1039_s25 = sshll.u32 (!%p141_p9), %s1101_s24, 4  ;;  %s1040_s25 = int_to_ptr.vmem [resolvable:$false] %s1039_s25 }
  0x12   : > { %v483_v16 = vand.u32 (!%p141_p9), %v986_v14, %v481_v15  ;;  %s1041_s26 = scalar_lea.vmem (!%p141_p9), %s1040_s25, 2048 }
  0x13   : > { %488 = vmatpush1.bf16.msra.mxu0 (!%p141_p9), %v978_v2  ;;  %925 = vmatpush1.bf16.msra.mxu1 (!%p141_p9), %v978_v2 }
  0x14   : > { %489 = vmatprep.subr.bf16.mxu0 (!%p141_p9), %v1099_v1  ;;  %916 = vmatprep.subr.bf16.mxu1 (!%p141_p9), %v1099_v1 }
  0x15   : > { %s165_s30 = scalar_select %p164_p10, %s1145_s16, 1 }
  0x17   : > { %490 = vmatpush1.bf16.msra.mxu0 %v979_v3  ;;  %926 = vmatpush1.bf16.msra.mxu1 %v979_v3  ;;  %s912_s6 = sshll.u32 %s165_s30, 8 }
  0x18   : > { %491 = vmatprep.subr.bf16.mxu0 %v1099_v1  ;;  %917 = vmatprep.subr.bf16.mxu1 %v1099_v1  ;;  %s1189_s9 = scalar_lea.vmem %s1396_s0, %s912_s6  ;;  %s161_s6 = sand.u32 1, %s1089_s13  }
  0x19   : > { %v989_v5 = vld [vmem:[%s1189_s9 + $0x4] ss:$8 sps:$4 sm:$0xff]   ;;  %v987_v17 = vld [vmem:[%s1189_s9] ss:$8 sps:$4 sm:$0xff]   ;;  %v993_v19 = vld [vmem:[%s1189_s9 + $0x14] ss:$8 sps:$4 sm:$0xff]  }
  0x1a   : > { %v992_v7 = vld [vmem:[%s1189_s9 + $0x84] ss:$8 sps:$4 sm:$0xff]   ;;  %891 = vmatprep.mubr.msk.bf16.mxu0 %vm429_vm0, %v989_v5  ;;  %v990_v18 = vld [vmem:[%s1189_s9 + $0x80] ss:$8 sps:$4 sm:$0xff]   ;;  %v995_v20 = vld [vmem:[%s1189_s9 + $0x94] ss:$8 sps:$4 sm:$0xff]  }
  0x1b   : > { %492 = vmatpush1.bf16.msra.mxu0 %v980_v4  ;;  %927 = vmatpush1.bf16.msra.mxu1 %v980_v4  ;;  %v997_v21 = vld [vmem:[%s1189_s9 + $0x10] ss:$8 sps:$4 sm:$0xff]   ;;  %v999_v23 = vld [vmem:[%s1189_s9 + $0x24] ss:$8 sps:$4 sm:$0xff]   ;;  %v1003_v25 = vld [vmem:[%s1189_s9 + $0x20] ss:$8 sps:$4 sm:$0xff]  }
  0x1c   : > { %493 = vmatprep.subr.bf16.mxu0 %v1099_v1  ;;  %918 = vmatprep.subr.bf16.mxu1 %v1099_v1  ;;  %v998_v22 = vld [vmem:[%s1189_s9 + $0x90] ss:$8 sps:$4 sm:$0xff]   ;;  %v1001_v24 = vld [vmem:[%s1189_s9 + $0xa4] ss:$8 sps:$4 sm:$0xff]   ;;  %v1004_v26 = vld [vmem:[%s1189_s9 + $0xa0] ss:$8 sps:$4 sm:$0xff]  }
  0x1d   : > { %899 = vmatprep.mubr.msk.bf16.mxu1 %vm429_vm0, %v992_v7  ;;  %v1005_v27 = vld [vmem:[%s1189_s9 + $0x34] ss:$8 sps:$4 sm:$0xff]   ;;  %v1009_v29 = vld [vmem:[%s1189_s9 + $0x30] ss:$8 sps:$4 sm:$0xff]   ;;  %v1011_v31 = vld [vmem:[%s1189_s9 + $0x44] ss:$8 sps:$4 sm:$0xff]  }
  0x1e   : > { %v1007_v28 = vld [vmem:[%s1189_s9 + $0xb4] ss:$8 sps:$4 sm:$0xff]   ;;  %v1010_v30 = vld [vmem:[%s1189_s9 + $0xb0] ss:$8 sps:$4 sm:$0xff]   ;;  %v1013_v32 = vld [vmem:[%s1189_s9 + $0xc4] ss:$8 sps:$4 sm:$0xff]  }
  0x1f   : > { %494 = vmatpush1.bf16.msra.mxu0 %v981_v6  ;;  %928 = vmatpush1.bf16.msra.mxu1 %v981_v6  ;;  %v1015_v33 = vld [vmem:[%s1189_s9 + $0x40] ss:$8 sps:$4 sm:$0xff]   ;;  %v1017_v35 = vld [vmem:[%s1189_s9 + $0x54] ss:$8 sps:$4 sm:$0xff]   ;;  %v1021_v37 = vld [vmem:[%s1189_s9 + $0x50] ss:$8 sps:$4 sm:$0xff]  }
  0x20   : > { %495 = vmatprep.subr.bf16.mxu0 %v1099_v1  ;;  %919 = vmatprep.subr.bf16.mxu1 %v1099_v1  ;;  %v1016_v34 = vld [vmem:[%s1189_s9 + $0xc0] ss:$8 sps:$4 sm:$0xff]   ;;  %v1019_v36 = vld [vmem:[%s1189_s9 + $0xd4] ss:$8 sps:$4 sm:$0xff]   ;;  %v1022_v38 = vld [vmem:[%s1189_s9 + $0xd0] ss:$8 sps:$4 sm:$0xff]  }
  0x21   : > { %v1023_v39 = vld [vmem:[%s1189_s9 + $0x64] ss:$8 sps:$4 sm:$0xff]   ;;  %v1027_v41 = vld [vmem:[%s1189_s9 + $0x60] ss:$8 sps:$4 sm:$0xff]   ;;  %v1029_v43 = vld [vmem:[%s1189_s9 + $0x74] ss:$8 sps:$4 sm:$0xff]  }
  0x22   : > { %v1025_v40 = vld [vmem:[%s1189_s9 + $0xe4] ss:$8 sps:$4 sm:$0xff]   ;;  %v1028_v42 = vld [vmem:[%s1189_s9 + $0xe0] ss:$8 sps:$4 sm:$0xff]   ;;  %v1031_v44 = vld [vmem:[%s1189_s9 + $0xf4] ss:$8 sps:$4 sm:$0xff]  }
  0x23   : > { %496 = vmatpush1.bf16.msra.mxu0 %v982_v8  ;;  %929 = vmatpush1.bf16.msra.mxu1 %v982_v8  ;;  %v1033_v45 = vld [vmem:[%s1189_s9 + $0x70] ss:$8 sps:$4 sm:$0xff]   ;;  %s845_s7 = sshll.u32 %s161_s6, 6 }
  0x24   : > { %497 = vmatprep.subr.bf16.mxu0 %v1099_v1  ;;  %920 = vmatprep.subr.bf16.mxu1 %v1099_v1  ;;  %v1034_v46 = vld [vmem:[%s1189_s9 + $0xf0] ss:$8 sps:$4 sm:$0xff]   ;;  %s1288_s8 = scalar_lea.vmem [#allocation2], %s845_s7  ;;  %s913_s9 = sshll.u32 %s1145_s16, 10 }
  0x25   : > { %s779_s10 = sshll.u32 %s1288_s8, 4  ;;  %s1343_s19 = scalar_lea.hbm %s1399_s3, %s913_s9  ;;  %s1345_s10 = int_to_ptr.vmem [resolvable:$true] %s779_s10 }
  0x26   : > { %s1355_s16 = scalar_lea.sflag [#allocation3], %s161_s6  ;;  %s1035_s20 = scalar_lea.vmem %s1345_s10, 1024 }
  0x27   : > { %498 = vmatpush1.bf16.msra.mxu0 %v983_v9  ;;  %930 = vmatpush1.bf16.msra.mxu1 %v983_v9  ;;  %p1036_p11 = scmp.ne.s32.totalorder %s1345_s10, %s1035_s20  ;;  %p1042_p0 = scmp.lt.s32.totalorder %s1345_s10, %s1040_s25 }
  0x28   : > { %499 = vmatprep.subr.bf16.mxu0 %v1099_v1  ;;  %921 = vmatprep.subr.bf16.mxu1 %v1099_v1  ;;  %p1043_p1 = scmp.lt.s32.totalorder %s1041_s26, %s1035_s20 }
  0x29   : > { %p1037_p12 = pnand %p1036_p11, %p1162_p5 }
  0x2a   : > { %p1044_p2 = por %p1043_p1, %p1042_p0 }
  0x2b   : > { %500 = vmatpush1.bf16.msra.mxu0 %v984_v10  ;;  %931 = vmatpush1.bf16.msra.mxu1 %v984_v10  ;;  %p1038_p13 = pneg %p1037_p12 }
  0x2c   : > { %501 = vmatprep.subr.bf16.mxu0 %v1099_v1  ;;  %922 = vmatprep.subr.bf16.mxu1 %v1099_v1 }
  0x2d   : > { %p1045_p3 = pnand %p1044_p2, %p1038_p13 }
  0x2f   : > { %502 = vmatpush1.bf16.msra.mxu0 %v985_v13  ;;  %932 = vmatpush1.bf16.msra.mxu1 %v985_v13 }
  0x30   : > { %503 = vmatprep.subr.bf16.mxu0 %v1099_v1  ;;  %923 = vmatprep.subr.bf16.mxu1 %v1099_v1 }
  0x33   : > { %504 = vmatpush1.bf16.msra.mxu0 %v483_v16  ;;  %933 = vmatpush1.bf16.msra.mxu1 %v483_v16 }
  0x36   : > { %518 = vmatmul.mubr.bf16.vlgmr.msra.gmra.mrb[0].mxu0 %v987_v17  ;;  %582 = vmatmul.mubr.bf16.vlgmr.msra.gmra.mrb[0].mxu1 %v990_v18 }
  0x37   : > { %892 = vmatprep.mubr.msk.bf16.mxu0 %vm429_vm0, %v993_v19  ;;  %900 = vmatprep.mubr.msk.bf16.mxu1 %vm429_vm0, %v995_v20 }
  0x3e   : > { %526 = vmatmul.mubr.bf16.gmra.mrb[4].mxu0 %v997_v21  ;;  %590 = vmatmul.mubr.bf16.gmra.mrb[4].mxu1 %v998_v22 }
  0x3f   : > { %893 = vmatprep.mubr.msk.bf16.mxu0 %vm429_vm0, %v999_v23  ;;  %901 = vmatprep.mubr.msk.bf16.mxu1 %vm429_vm0, %v1001_v24 }
  0x46   : > { %534 = vmatmul.mubr.bf16.gmra.mrb[8].mxu0 %v1003_v25  ;;  %598 = vmatmul.mubr.bf16.gmra.mrb[8].mxu1 %v1004_v26 }
  0x47   : > { %894 = vmatprep.mubr.msk.bf16.mxu0 %vm429_vm0, %v1005_v27  ;;  %902 = vmatprep.mubr.msk.bf16.mxu1 %vm429_vm0, %v1007_v28 }
  0x4e   : > { %542 = vmatmul.mubr.bf16.gmra.mrb[12].mxu0 %v1009_v29  ;;  %606 = vmatmul.mubr.bf16.gmra.mrb[12].mxu1 %v1010_v30 }
  0x4f   : > { %895 = vmatprep.mubr.msk.bf16.mxu0 %vm429_vm0, %v1011_v31  ;;  %903 = vmatprep.mubr.msk.bf16.mxu1 %vm429_vm0, %v1013_v32 }
  0x56   : > { %550 = vmatmul.mubr.bf16.gmra.mrb[16].mxu0 %v1015_v33  ;;  %614 = vmatmul.mubr.bf16.gmra.mrb[16].mxu1 %v1016_v34 }
  0x57   : > { %896 = vmatprep.mubr.msk.bf16.mxu0 %vm429_vm0, %v1017_v35  ;;  %904 = vmatprep.mubr.msk.bf16.mxu1 %vm429_vm0, %v1019_v36 }
  0x5e   : > { %558 = vmatmul.mubr.bf16.gmra.mrb[20].mxu0 %v1021_v37  ;;  %622 = vmatmul.mubr.bf16.gmra.mrb[20].mxu1 %v1022_v38 }
  0x5f   : > { %897 = vmatprep.mubr.msk.bf16.mxu0 %vm429_vm0, %v1023_v39  ;;  %905 = vmatprep.mubr.msk.bf16.mxu1 %vm429_vm0, %v1025_v40 }
  0x66   : > { %566 = vmatmul.mubr.bf16.gmra.mrb[24].mxu0 %v1027_v41  ;;  %630 = vmatmul.mubr.bf16.gmra.mrb[24].mxu1 %v1028_v42 }
  0x67   : > { %898 = vmatprep.mubr.msk.bf16.mxu0 %vm429_vm0, %v1029_v43  ;;  %906 = vmatprep.mubr.msk.bf16.mxu1 %vm429_vm0, %v1031_v44 }
  0x6e   : > { %574 = vmatmul.mubr.bf16.gmra.mrb[28].mxu0 %v1033_v45  ;;  %638 = vmatmul.mubr.bf16.gmra.mrb[28].mxu1 %v1034_v46 }
 0x109   : > { %v519_v47 = vpop.f32.mrb[0].mxu0  ;;  %v1258_v48 = vpop.f32.mrb[0].mxu1 }
 0x10a   : > { %v521_v49 = vpop.f32.mrb[1].mxu0  ;;  %v585_v50 = vpop.f32.mrb[1].mxu1  ;;  %v520_v56 = vadd.f32 %v1265_v55, %v519_v47 }
 0x10b   : > { %v522_v51 = vpop.f32.mrb[2].mxu0  ;;  %v1260_v52 = vpop.f32.mrb[2].mxu1 }
 0x10c   : > { %v524_v53 = vpop.f32.mrb[3].mxu0  ;;  %v588_v54 = vpop.f32.mrb[3].mxu1  ;;  %v523_v59 = vadd.f32 %v1265_v55, %v522_v51  ;;  %v646_v1 = vmax.f32 %v520_v56, 0.0 }
 0x10e   : > { %v647_v6 = vmax.f32 %v523_v59, 0.0 }
 0x111   : > { %v527_v57 = vpop.f32.mrb[4].mxu0  ;;  %v591_v58 = vpop.f32.mrb[4].mxu1 }
 0x112   : > { %v528_v60 = vadd.f32 %v1265_v55, %v527_v57  ;;  %v529_v61 = vpop.f32.mrb[5].mxu0  ;;  %v593_v62 = vpop.f32.mrb[5].mxu1  ;;  %v1273_v9 = vadd.f32 %v1265_v55, %v591_v58 }
 0x113   : > { %v530_v63 = vpop.f32.mrb[6].mxu0  ;;  %v594_v0 = vpop.f32.mrb[6].mxu1 }
 0x114   : > { %v648_v2 = vmax.f32 %v528_v60, 0.0  ;;  %v531_v3 = vadd.f32 %v1265_v55, %v530_v63  ;;  %v532_v4 = vpop.f32.mrb[7].mxu0  ;;  %v596_v5 = vpop.f32.mrb[7].mxu1  ;;  %v664_v19 = vmax.f32 %v1273_v9, 0.0  ;;  %v1281_v20 = vadd.f32 %v1265_v55, %v594_v0 }
 0x116   : > { %v678_v7 = vmax.f32 %v646_v1, %v648_v2  ;;  %v649_v8 = vmax.f32 %v531_v3, 0.0  ;;  %v665_v34 = vmax.f32 %v1281_v20, 0.0 }
 0x118   : > { %v679_v10 = vmax.f32 %v647_v6, %v649_v8 }
 0x119   : > { %v535_v11 = vpop.f32.mrb[8].mxu0  ;;  %v599_v12 = vpop.f32.mrb[8].mxu1 }
 0x11a   : > { %v681_v13 = vrot.slane %v679_v10, 7  ;;  %v684_v14 = vmax.f32 %v678_v7, %v679_v10  ;;  %v536_v15 = vadd.f32 %v1265_v55, %v535_v11  ;;  %v600_v16 = vadd.f32 %v1265_v55, %v599_v12  ;;  %v537_v17 = vpop.f32.mrb[9].mxu0  ;;  %v601_v18 = vpop.f32.mrb[9].mxu1 }
 0x11b   : > { %v538_v21 = vpop.f32.mrb[10].mxu0  ;;  %v602_v22 = vpop.f32.mrb[10].mxu1 }
 0x11c   : > { %v683_v23 = vsel %vm478_vm1, 0.0, %v681_v13  ;;  %v650_v24 = vmax.f32 %v536_v15, 0.0  ;;  %v666_v25 = vmax.f32 %v600_v16, 0.0  ;;  %v539_v26 = vadd.f32 %v1265_v55, %v538_v21  ;;  %v540_v27 = vpop.f32.mrb[11].mxu0  ;;  %v604_v28 = vpop.f32.mrb[11].mxu1 }
 0x11d   : > { %v685_v29 = vmax.f32 %v684_v14, %v683_v23  ;;  %v603_v30 = vadd.f32 %v1265_v55, %v602_v22 }
 0x11e   : > { %v688_v31 = vmax.f32 %v648_v2, %v650_v24  ;;  %v732_v32 = vmax.f32 %v664_v19, %v666_v25  ;;  %v651_v33 = vmax.f32 %v539_v26, 0.0 }
 0x11f   : > { %687 = vst.msk [vmem:[%s1288_s8] sm:$0xff] %vm686_vm3, %v685_v29  ;;  %v667_v35 = vmax.f32 %v603_v30, 0.0 }
 0x120   : > { %v689_v36 = vmax.f32 %v649_v8, %v651_v33 }
 0x121   : > { %v733_v37 = vmax.f32 %v665_v34, %v667_v35  ;;  %v543_v38 = vpop.f32.mrb[12].mxu0  ;;  %v607_v39 = vpop.f32.mrb[12].mxu1 }
 0x122   : > { %v544_v40 = vadd.f32 %v1265_v55, %v543_v38  ;;  %v608_v41 = vadd.f32 %v1265_v55, %v607_v39  ;;  %v545_v42 = vpop.f32.mrb[13].mxu0  ;;  %v609_v43 = vpop.f32.mrb[13].mxu1 }
 0x123   : > { %v546_v44 = vpop.f32.mrb[14].mxu0  ;;  %v610_v45 = vpop.f32.mrb[14].mxu1 }
 0x124   : > { %v652_v46 = vmax.f32 %v544_v40, 0.0  ;;  %v668_v47 = vmax.f32 %v608_v41, 0.0  ;;  %v547_v49 = vadd.f32 %v1265_v55, %v546_v44  ;;  %v611_v50 = vadd.f32 %v1265_v55, %v610_v45  ;;  %v548_v51 = vpop.f32.mrb[15].mxu0  ;;  %v612_v53 = vpop.f32.mrb[15].mxu1 }
 0x126   : > { %v690_v54 = vmax.f32 %v688_v31, %v652_v46  ;;  %v734_v56 = vmax.f32 %v732_v32, %v668_v47  ;;  %v653_v57 = vmax.f32 %v547_v49, 0.0  ;;  %v669_v58 = vmax.f32 %v611_v50, 0.0 }
 0x128   : > { %v691_v59 = vmax.f32 %v689_v36, %v653_v57  ;;  %v735_v60 = vmax.f32 %v733_v37, %v669_v58 }
 0x129   : > { %v551_v61 = vpop.f32.mrb[16].mxu0  ;;  %v615_v62 = vpop.f32.mrb[16].mxu1 }
 0x12a   : > { %v693_v63 = vrot.slane %v691_v59, 7  ;;  %v696_v0 = vmax.f32 %v690_v54, %v691_v59  ;;  %v737_v1 = vrot.slane %v735_v60, 7  ;;  %v740_v2 = vmax.f32 %v734_v56, %v735_v60  ;;  %v553_v3 = vpop.f32.mrb[17].mxu0  ;;  %v617_v4 = vpop.f32.mrb[17].mxu1 }
 0x12b   : > { %v552_v5 = vadd.f32 %v1265_v55, %v551_v61  ;;  %v616_v6 = vadd.f32 %v1265_v55, %v615_v62  ;;  %v554_v7 = vpop.f32.mrb[18].mxu0  ;;  %v618_v8 = vpop.f32.mrb[18].mxu1 }
 0x12c   : > { %v695_v10 = vsel %vm478_vm1, 0.0, %v693_v63  ;;  %v739_v11 = vsel %vm478_vm1, 0.0, %v737_v1  ;;  %v555_v12 = vadd.f32 %v1265_v55, %v554_v7  ;;  %v619_v13 = vadd.f32 %v1265_v55, %v618_v8  ;;  %v556_v14 = vpop.f32.mrb[19].mxu0  ;;  %v620_v15 = vpop.f32.mrb[19].mxu1 }
 0x12d   : > { %v697_v16 = vmax.f32 %v696_v0, %v695_v10  ;;  %v741_v17 = vmax.f32 %v740_v2, %v739_v11  ;;  %v654_v18 = vmax.f32 %v552_v5, 0.0  ;;  %v670_v21 = vmax.f32 %v616_v6, 0.0 }
 0x12e   : > { %v655_v22 = vmax.f32 %v555_v12, 0.0  ;;  %v671_v23 = vmax.f32 %v619_v13, 0.0  ;;  %v584_v13 = vadd.f32 %v1265_v55, %v1258_v48 }
 0x12f   : > { %698 = vst.msk [vmem:[%s1288_s8 + $0x8] sm:$0xff] %vm686_vm3, %v697_v16  ;;  %742 = vst.msk [vmem:[%s1288_s8 + $0x28] sm:$0xff] %vm686_vm3, %v741_v17  ;;  %v699_v24 = vmax.f32 %v652_v46, %v654_v18  ;;  %v743_v25 = vmax.f32 %v668_v47, %v670_v21  ;;  %v587_v18 = vadd.f32 %v1265_v55, %v1260_v52 }
 0x130   : > { %v700_v26 = vmax.f32 %v653_v57, %v655_v22  ;;  %v744_v27 = vmax.f32 %v669_v58, %v671_v23  ;;  %v662_v48 = vmax.f32 %v584_v13, 0.0 }
 0x131   : > { %v559_v28 = vpop.f32.mrb[20].mxu0  ;;  %v623_v29 = vpop.f32.mrb[20].mxu1  ;;  %v663_v52 = vmax.f32 %v587_v18, 0.0 }
 0x132   : > { %v560_v30 = vadd.f32 %v1265_v55, %v559_v28  ;;  %v624_v31 = vadd.f32 %v1265_v55, %v623_v29  ;;  %v561_v32 = vpop.f32.mrb[21].mxu0  ;;  %v625_v33 = vpop.f32.mrb[21].mxu1 }
 0x133   : > { %v562_v35 = vpop.f32.mrb[22].mxu0  ;;  %v626_v36 = vpop.f32.mrb[22].mxu1 }
 0x134   : > { %v656_v37 = vmax.f32 %v560_v30, 0.0  ;;  %v672_v38 = vmax.f32 %v624_v31, 0.0  ;;  %v563_v39 = vadd.f32 %v1265_v55, %v562_v35  ;;  %v627_v40 = vadd.f32 %v1265_v55, %v626_v36  ;;  %v564_v41 = vpop.f32.mrb[23].mxu0  ;;  %v628_v42 = vpop.f32.mrb[23].mxu1 }
 0x136   : > { %v701_v43 = vmax.f32 %v699_v24, %v656_v37  ;;  %v745_v44 = vmax.f32 %v743_v25, %v672_v38  ;;  %v657_v45 = vmax.f32 %v563_v39, 0.0  ;;  %v673_v46 = vmax.f32 %v627_v40, 0.0 }
 0x138   : > { %v702_v47 = vmax.f32 %v700_v26, %v657_v45  ;;  %v746_v49 = vmax.f32 %v744_v27, %v673_v46 }
 0x139   : > { %v567_v50 = vpop.f32.mrb[24].mxu0  ;;  %v631_v51 = vpop.f32.mrb[24].mxu1 }
 0x13a   : > { %v704_v53 = vrot.slane %v702_v47, 7  ;;  %v707_v54 = vmax.f32 %v701_v43, %v702_v47  ;;  %v748_v56 = vrot.slane %v746_v49, 7  ;;  %v751_v57 = vmax.f32 %v745_v44, %v746_v49  ;;  %v569_v58 = vpop.f32.mrb[25].mxu0  ;;  %v633_v59 = vpop.f32.mrb[25].mxu1 }
 0x13b   : > { %v568_v60 = vadd.f32 %v1265_v55, %v567_v50  ;;  %v632_v61 = vadd.f32 %v1265_v55, %v631_v51  ;;  %v570_v62 = vpop.f32.mrb[26].mxu0  ;;  %v634_v63 = vpop.f32.mrb[26].mxu1 }
 0x13c   : > { %v706_v0 = vsel %vm478_vm1, 0.0, %v704_v53  ;;  %v750_v1 = vsel %vm478_vm1, 0.0, %v748_v56  ;;  %v571_v2 = vadd.f32 %v1265_v55, %v570_v62  ;;  %v635_v3 = vadd.f32 %v1265_v55, %v634_v63  ;;  %v572_v4 = vpop.f32.mrb[27].mxu0  ;;  %v636_v5 = vpop.f32.mrb[27].mxu1 }
 0x13d   : > { %v708_v6 = vmax.f32 %v707_v54, %v706_v0  ;;  %v752_v7 = vmax.f32 %v751_v57, %v750_v1  ;;  %v658_v8 = vmax.f32 %v568_v60, 0.0  ;;  %v674_v10 = vmax.f32 %v632_v61, 0.0 }
 0x13e   : > { %v659_v11 = vmax.f32 %v571_v2, 0.0  ;;  %v675_v12 = vmax.f32 %v635_v3, 0.0 }
 0x13f   : > { %709 = vst.msk [vmem:[%s1288_s8 + $0x10] sm:$0xff] %vm686_vm3, %v708_v6  ;;  %753 = vst.msk [vmem:[%s1288_s8 + $0x30] sm:$0xff] %vm686_vm3, %v752_v7  ;;  %v710_v14 = vmax.f32 %v656_v37, %v658_v8  ;;  %v754_v15 = vmax.f32 %v672_v38, %v674_v10 }
 0x140   : > { %v711_v16 = vmax.f32 %v657_v45, %v659_v11  ;;  %v755_v17 = vmax.f32 %v673_v46, %v675_v12 }
 0x141   : > { %v575_v21 = vpop.f32.mrb[28].mxu0  ;;  %v639_v22 = vpop.f32.mrb[28].mxu1 }
 0x142   : > { %v576_v23 = vadd.f32 %v1265_v55, %v575_v21  ;;  %v640_v24 = vadd.f32 %v1265_v55, %v639_v22  ;;  %v577_v25 = vpop.f32.mrb[29].mxu0  ;;  %v641_v26 = vpop.f32.mrb[29].mxu1 }
 0x143   : > { %v578_v27 = vpop.f32.mrb[30].mxu0  ;;  %v642_v28 = vpop.f32.mrb[30].mxu1 }
 0x144   : > { %v660_v29 = vmax.f32 %v576_v23, 0.0  ;;  %v676_v30 = vmax.f32 %v640_v24, 0.0  ;;  %v579_v31 = vadd.f32 %v1265_v55, %v578_v27  ;;  %v643_v32 = vadd.f32 %v1265_v55, %v642_v28  ;;  %v580_v33 = vpop.f32.mrb[31].mxu0  ;;  %v644_v35 = vpop.f32.mrb[31].mxu1 }
 0x146   : > { %v712_v36 = vmax.f32 %v710_v14, %v660_v29  ;;  %v721_v37 = vmax.f32 %v660_v29, %v662_v48  ;;  %v756_v38 = vmax.f32 %v754_v15, %v676_v30  ;;  %v661_v39 = vmax.f32 %v579_v31, 0.0 }
 0x147   : > { %v677_v40 = vmax.f32 %v643_v32, 0.0 }
 0x148   : > { %v723_v41 = vmax.f32 %v721_v37, %v664_v19  ;;  %v713_v42 = vmax.f32 %v711_v16, %v661_v39  ;;  %v722_v43 = vmax.f32 %v661_v39, %v663_v52 }
 0x149   : > { %v757_v44 = vmax.f32 %v755_v17, %v677_v40 }
 0x14a   : > { %v715_v45 = vrot.slane %v713_v42, 7  ;;  %v718_v46 = vmax.f32 %v712_v36, %v713_v42  ;;  %v724_v55 = vmax.f32 %v722_v43, %v665_v34 }
 0x14b   : > { %v759_v47 = vrot.slane %v757_v44, 7  ;;  %v762_v49 = vmax.f32 %v756_v38, %v757_v44 }
 0x14c   : > { %v717_v50 = vsel %vm478_vm1, 0.0, %v715_v45  ;;  %v726_v9 = vrot.slane %v724_v55, 7  ;;  %v729_v19 = vmax.f32 %v723_v41, %v724_v55 }
 0x14d   : > { %v719_v51 = vmax.f32 %v718_v46, %v717_v50  ;;  %v761_v53 = vsel %vm478_vm1, 0.0, %v759_v47 }
 0x14e   : > { %v728_v54 = vsel %vm478_vm1, 0.0, %v726_v9  ;;  %v763_v56 = vmax.f32 %v762_v49, %v761_v53 }
 0x14f   : > { %720 = vst.msk [vmem:[%s1288_s8 + $0x18] sm:$0xff] %vm686_vm3, %v719_v51  ;;  %v730_v20 = vmax.f32 %v729_v19, %v728_v54 }
 0x150   : > { %764 = vst.msk [vmem:[%s1288_s8 + $0x38] sm:$0xff] %vm686_vm3, %v763_v56 }
 0x151   : > { %731 = vst.msk [vmem:[%s1288_s8 + $0x20] sm:$0xff] %vm686_vm3, %v730_v20 }
 0x152   : > { %1048 = shalt.err (!%p1045_p3)
}
 0x153   : > { %s1049_s27 = scalar_lea.hbm %s1343_s19, 1024  ;;  %s1053_s30 = scalar_lea.hbm %s1399_s3, 2048 }
 0x154   : > { %p1050_p4 = scmp.ne.s32.totalorder %s1343_s19, %s1049_s27  ;;  %p1054_p9 = scmp.lt.u32.totalorder %s1343_s19, %s1399_s3 }
 0x155   : > { %p1055_p10 = scmp.lt.u32.totalorder %s1053_s30, %s1049_s27  ;;  %p1057_p12 = scmp.lt.u32.totalorder %s1049_s27, %s1343_s19 }
 0x156   : > { %p1051_p7 = pnand %p1050_p4, %p1162_p5 }
 0x157   : > { %p1056_p11 = por %p1055_p10, %p1054_p9 }
 0x158   : > { %p1052_p8 = pneg %p1051_p7 }
 0x159   : > { %p1058_p13 = por %p1057_p12, %p1056_p11 }
 0x15b   : > { %p1059_p0 = pnand %p1058_p13, %p1052_p8 }
 0x15d   : > { %1062 = shalt.err (!%p1059_p0)
}
 0x15e   : > { %s1102_s6 = smov 128   ;;  %s1103_s7 = smov 8  }
 0x15f   : > { %934 = dma.vmem_to_hbm [thread:$0]  (%p1162_p5), %s1345_s10, 1024, %s1343_s19, %s1355_s16, %s1102_s6, %s1102_s6, %s1103_s7  }
 0x160 PF: > { %p940_p1 = scmp.ge.s32.totalorder %s1097_s15, 2  ;;  %s794_s8 = sand.u32 1, %s1085_s12  }
 0x161   : > { %s795_s9 = scalar_lea.sflag [#allocation3], %s794_s8 }
 0x162   : > { %p937_p2 = pnand %p940_p1, %p1166_p6 }
 0x164   : > { %1080 = dma.done.wait (!%p937_p2), %s795_s9, 1024  }
 0x165   : > { %1082 = vsyncadd (!%p937_p2), %s795_s9, 4294966272  ;;  %p13_p3 = scmp.ge.s32.totalorder %s1149_s18, 4   ;;  %s1402_s12 = smov %s1089_s13 }
 0x166   : > { %s1403_s13 = smov %s1093_s14  ;;  %s1404_s14 = smov %s1160_s21 }
 0x167   : > { %s1405_s15 = smov %s1149_s18  ;;  %15 = sbr.rel (!%p13_p3) target bundleno = 3 (0x3), region = 67 }
 0x16e   :  { %800 = vsyncpa [#allocation3], 1 }
 0x16f   :  { %802 = vsyncpa [#allocation3 + $0x1], 1 }

</bundles_post_ra>
